<compile_context>
chip_gen: v7x
topology: tpu7x:2x2x1
jax: 0.10.0
libtpu: 0.0.40
codegen_flags: <defaults>
</compile_context>

<pallas_src>
import jax
import jax.numpy as jnp
from jax.experimental import pallas as pl
from jax.experimental.pallas import tpu as pltpu


def _make_kernel(wp: int, ext: int, m: int):
    """wp = padded width (W+2), ext = flat-axis extension, m = (H+2)*(W+2)."""
    # Tap order (dy, dx) row-major == torch weight order (ky*3 + kx).
    shifts = tuple(dy * wp + dx for dy in (-1, 0, 1) for dx in (-1, 0, 1))

    def kernel(xe_ref, xres_ref, w1_ref, s1_ref, b1_ref,
               w2_ref, s2_ref, b2_ref, mask_ref, out_ref):
        coutp = out_ref.shape[1]

        xe = xe_ref[0]                                      # (Cp, Lseg) bf16

        # ---- conv1: im2col patch from 9 shifted lane windows, one matmul ----
        patch1 = jnp.concatenate(
            [xe[:, ext + s: ext + s + m] for s in shifts], axis=0)  # (9Cp, M)
        y1 = jnp.dot(w1_ref[...], patch1,
                     preferred_element_type=jnp.float32)            # (Cp, M)

        # folded BN1 + ReLU in f32; zero the 1-pixel border so it acts as
        # conv2's zero padding; cast to bf16 for the second matmul.
        a1 = jnp.maximum(y1 * s1_ref[...] + b1_ref[...], 0.0) * mask_ref[...]
        a1 = a1.astype(jnp.bfloat16)

        # Extend along the flat axis so conv2's shifted windows stay in
        # bounds (extension values are never read by interior outputs).
        zext = jnp.zeros((coutp, ext), dtype=jnp.bfloat16)
        a1e = jnp.concatenate([zext, a1, zext], axis=1)     # (Cp, Lseg)

        # ---- conv2: same single fused matmul ----
        patch2 = jnp.concatenate(
            [a1e[:, ext + s: ext + s + m] for s in shifts], axis=0)
        y2 = jnp.dot(w2_ref[...], patch2,
                     preferred_element_type=jnp.float32)

        # folded BN2 + identity residual (f32) + ReLU; lane-dense store.
        out = jnp.maximum(y2 * s2_ref[...] + b2_ref[...] + xres_ref[0], 0.0)
        out_ref[0] = out.astype(out_ref.dtype)

    return kernel


def basic_block_pallas(x_nchw, params):
    """x_nchw: (B, C, H, W) float32.  Returns (B, C, H, W) float32."""
    w1, g1, be1, m1, v1, w2, g2, be2, m2, v2 = params
    eps = 1e-5

    B, C, H, W = x_nchw.shape
    Cout = w1.shape[0]
    assert Cout == C, "identity residual requires inplanes == planes"
    # TODO(synk): stride>1 / downsample variant of BasicBlock not implemented
    # (module defaults: stride=1, downsample=None).

    f32, bf16 = jnp.float32, jnp.bfloat16
    Cp = -(-C // 8) * 8                      # pad channels to sublane multiple
    Hp, Wp = H + 2, W + 2
    M = Hp * Wp
    EXT = Wp + 1                             # covers max tap shift |dy*Wp+dx|
    Lseg = M + 2 * EXT

    # ---- fold BN (inference): y = conv * scale + bias, pad to Cp channels ----
    inv1 = g1 / jnp.sqrt(v1 + eps)
    inv2 = g2 / jnp.sqrt(v2 + eps)

    def pad_c(v):
        return jnp.pad(v.astype(f32), (0, Cp - Cout)).reshape(Cp, 1)

    s1 = pad_c(inv1)
    b1 = pad_c(be1 - m1 * inv1)
    s2 = pad_c(inv2)
    b2 = pad_c(be2 - m2 * inv2)

    # ---- pack conv weights: (Cout, Cin, 3, 3) -> (Cp, 9*Cp) bf16,
    #      column order = tap-major (ky*3+kx), channel-minor, matching the
    #      kernel's im2col patch layout.
    def pack_w(w):
        co, ci = w.shape[0], w.shape[1]
        wt = jnp.transpose(w, (0, 2, 3, 1))                      # (co,3,3,ci)
        wt = jnp.pad(wt, ((0, Cp - co), (0, 0), (0, 0), (0, Cp - ci)))
        return wt.reshape(Cp, 9 * Cp).astype(bf16)

    w1p = pack_w(w1)
    w2p = pack_w(w2)

    # ---- activations: NCHW, zero-pad spatial by 1, pad channels, flatten ----
    xpad = jnp.pad(x_nchw.astype(f32),
                   ((0, 0), (0, Cp - C), (1, 1), (1, 1)))        # (B,Cp,Hp,Wp)
    xflat = xpad.reshape(B, Cp, M)                               # f32 residual
    xe = jnp.pad(xflat.astype(bf16),
                 ((0, 0), (0, 0), (EXT, EXT)))                   # (B,Cp,Lseg)

    # ---- interior mask: 1 inside the HxW image, 0 on the 1-pixel border ----
    yy = jax.lax.broadcasted_iota(jnp.int32, (Hp, Wp), 0)
    xx = jax.lax.broadcasted_iota(jnp.int32, (Hp, Wp), 1)
    interior = (yy >= 1) & (yy <= H) & (xx >= 1) & (xx <= W)
    mask = interior.astype(f32).reshape(1, M)

    kernel = _make_kernel(Wp, EXT, M)

    out_flat = pl.pallas_call(
        kernel,
        out_shape=jax.ShapeDtypeStruct((B, Cp, M), f32),
        grid_spec=pltpu.PrefetchScalarGridSpec(
            num_scalar_prefetch=0,
            grid=(B,),
            in_specs=[
                pl.BlockSpec((1, Cp, Lseg), lambda b: (b, 0, 0)),   # xe (bf16)
                pl.BlockSpec((1, Cp, M), lambda b: (b, 0, 0)),      # x residual (f32)
                pl.BlockSpec((Cp, 9 * Cp), lambda b: (0, 0)),       # w1 packed
                pl.BlockSpec((Cp, 1), lambda b: (0, 0)),            # bn1 scale
                pl.BlockSpec((Cp, 1), lambda b: (0, 0)),            # bn1 bias
                pl.BlockSpec((Cp, 9 * Cp), lambda b: (0, 0)),       # w2 packed
                pl.BlockSpec((Cp, 1), lambda b: (0, 0)),            # bn2 scale
                pl.BlockSpec((Cp, 1), lambda b: (0, 0)),            # bn2 bias
                pl.BlockSpec((1, M), lambda b: (0, 0)),             # border mask
            ],
            out_specs=pl.BlockSpec((1, Cp, M), lambda b: (b, 0, 0)),
        ),
        compiler_params=pltpu.CompilerParams(
            dimension_semantics=("parallel",)),
    )(xe, xflat, w1p, s1, b1, w2p, s2, b2, mask)

    # (B, Cp, M) -> (B, Cout, H, W): drop channel padding and the spatial halo.
    return out_flat.reshape(B, Cp, Hp, Wp)[:, :Cout, 1:H + 1, 1:W + 1]


def _reference(x_nchw, params):
    """Pure-JAX f32 reference (lax conv) for correctness check."""
    w1, g1, be1, m1, v1, w2, g2, be2, m2, v2 = params
    eps = 1e-5

    def conv(x, w):
        return jax.lax.conv_general_dilated(
            x, w, window_strides=(1, 1), padding=((1, 1), (1, 1)),
            dimension_numbers=("NCHW", "OIHW", "NCHW"))

    def bn(x, g, b, m, v):
        g = g.reshape(1, -1, 1, 1); b = b.reshape(1, -1, 1, 1)
        m = m.reshape(1, -1, 1, 1); v = v.reshape(1, -1, 1, 1)
        return (x - m) / jnp.sqrt(v + eps) * g + b

    out = jax.nn.relu(bn(conv(x_nchw, w1), g1, be1, m1, v1))
    out = bn(conv(out, w2), g2, be2, m2, v2)
    return jax.nn.relu(out + x_nchw)


if __name__ == "__main__":
    key = jax.random.PRNGKey(0)
    B, C, H, W = 2, 4, 16, 16            # inplanes = planes = 4, stride = 1
    ks = jax.random.split(key, 8)

    x = jax.random.normal(ks[0], (B, C, H, W), jnp.float32)

    w1 = jax.random.normal(ks[1], (C, C, 3, 3), jnp.float32) * 0.1
    w2 = jax.random.normal(ks[2], (C, C, 3, 3), jnp.float32) * 0.1
    g1 = 1.0 + 0.1 * jax.random.normal(ks[3], (C,), jnp.float32)
    be1 = 0.1 * jax.random.normal(ks[4], (C,), jnp.float32)
    g2 = 1.0 + 0.1 * jax.random.normal(ks[5], (C,), jnp.float32)
    be2 = 0.1 * jax.random.normal(ks[6], (C,), jnp.float32)
    m1 = jnp.zeros((C,), jnp.float32); v1 = jnp.ones((C,), jnp.float32)
    m2 = jnp.zeros((C,), jnp.float32); v2 = jnp.ones((C,), jnp.float32)

    params = (w1, g1, be1, m1, v1, w2, g2, be2, m2, v2)

    out = jax.block_until_ready(basic_block_pallas(x, params))
    ref = jax.block_until_ready(_reference(x, params))

    assert out.shape == (B, C, H, W)
    # Matmuls run with bf16 MXU inputs (f32 accumulation / BN / residual), so
    # compare against the pure-f32 reference with a bf16-appropriate tolerance.
    err = float(jnp.max(jnp.abs(out - ref)))
    assert jnp.allclose(out, ref, atol=3e-2, rtol=3e-2), f"max abs err {err}"
    print("KERNEL_OK")
</pallas_src>

<mosaic_0001>
module attributes {stable_mosaic.version = 11 : i64} {
  func.func @kernel(%arg0: i32, %arg1: memref<1x8x362xbf16, #tpu.memory_space<vmem>>, %arg2: memref<1x8x324xf32, #tpu.memory_space<vmem>>, %arg3: memref<8x72xbf16, #tpu.memory_space<vmem>>, %arg4: memref<8x1xf32, #tpu.memory_space<vmem>>, %arg5: memref<8x1xf32, #tpu.memory_space<vmem>>, %arg6: memref<8x72xbf16, #tpu.memory_space<vmem>>, %arg7: memref<8x1xf32, #tpu.memory_space<vmem>>, %arg8: memref<8x1xf32, #tpu.memory_space<vmem>>, %arg9: memref<1x324xf32, #tpu.memory_space<vmem>>, %arg10: memref<1x8x324xf32, #tpu.memory_space<vmem>>) attributes {dimension_semantics = [#tpu.dimension_semantics<parallel>], iteration_bounds = array<i64: 2>, scalar_prefetch = 0 : i64, scratch_operands = 0 : i64, tpu.core_type = #tpu.core_type<tc>, window_params = [{transform_indices = @transform_0, window_bounds = array<i64: 1, 8, 362>}, {transform_indices = @transform_1, window_bounds = array<i64: 1, 8, 324>}, {pipeline_mode = #tpu.pipeline_mode<synchronous>, transform_indices = @transform_2, window_bounds = array<i64: 8, 72>}, {pipeline_mode = #tpu.pipeline_mode<synchronous>, transform_indices = @transform_3, window_bounds = array<i64: 8, 1>}, {pipeline_mode = #tpu.pipeline_mode<synchronous>, transform_indices = @transform_4, window_bounds = array<i64: 8, 1>}, {pipeline_mode = #tpu.pipeline_mode<synchronous>, transform_indices = @transform_5, window_bounds = array<i64: 8, 72>}, {pipeline_mode = #tpu.pipeline_mode<synchronous>, transform_indices = @transform_6, window_bounds = array<i64: 8, 1>}, {pipeline_mode = #tpu.pipeline_mode<synchronous>, transform_indices = @transform_7, window_bounds = array<i64: 8, 1>}, {pipeline_mode = #tpu.pipeline_mode<synchronous>, transform_indices = @transform_8, window_bounds = array<i64: 1, 324>}, {transform_indices = @transform_9, window_bounds = array<i64: 1, 8, 324>}]} {
    %c0 = arith.constant 0 : index
    %c0_0 = arith.constant 0 : index
    %c0_1 = arith.constant 0 : index
    %0 = vector.load %arg1[%c0, %c0_0, %c0_1] : memref<1x8x362xbf16, #tpu.memory_space<vmem>>, vector<1x8x362xbf16>
    %1 = vector.shape_cast %0 : vector<1x8x362xbf16> to vector<8x362xbf16>
    %2 = vector.extract_strided_slice %1 {offsets = [0, 0], sizes = [8, 324], strides = [1, 1]} : vector<8x362xbf16> to vector<8x324xbf16>
    %3 = vector.extract_strided_slice %1 {offsets = [0, 1], sizes = [8, 324], strides = [1, 1]} : vector<8x362xbf16> to vector<8x324xbf16>
    %4 = vector.extract_strided_slice %1 {offsets = [0, 2], sizes = [8, 324], strides = [1, 1]} : vector<8x362xbf16> to vector<8x324xbf16>
    %5 = vector.extract_strided_slice %1 {offsets = [0, 18], sizes = [8, 324], strides = [1, 1]} : vector<8x362xbf16> to vector<8x324xbf16>
    %6 = vector.extract_strided_slice %1 {offsets = [0, 19], sizes = [8, 324], strides = [1, 1]} : vector<8x362xbf16> to vector<8x324xbf16>
    %7 = vector.extract_strided_slice %1 {offsets = [0, 20], sizes = [8, 324], strides = [1, 1]} : vector<8x362xbf16> to vector<8x324xbf16>
    %8 = vector.extract_strided_slice %1 {offsets = [0, 36], sizes = [8, 324], strides = [1, 1]} : vector<8x362xbf16> to vector<8x324xbf16>
    %9 = vector.extract_strided_slice %1 {offsets = [0, 37], sizes = [8, 324], strides = [1, 1]} : vector<8x362xbf16> to vector<8x324xbf16>
    %10 = vector.extract_strided_slice %1 {offsets = [0, 38], sizes = [8, 324], strides = [1, 1]} : vector<8x362xbf16> to vector<8x324xbf16>
    %11 = tpu.concatenate %2, %3, %4, %5, %6, %7, %8, %9, %10 in 0 : vector<8x324xbf16>, vector<8x324xbf16>, vector<8x324xbf16>, vector<8x324xbf16>, vector<8x324xbf16>, vector<8x324xbf16>, vector<8x324xbf16>, vector<8x324xbf16>, vector<8x324xbf16> -> vector<72x324xbf16>
    %c0_2 = arith.constant 0 : index
    %c0_3 = arith.constant 0 : index
    %12 = vector.load %arg3[%c0_2, %c0_3] : memref<8x72xbf16, #tpu.memory_space<vmem>>, vector<8x72xbf16>
    %cst = arith.constant dense<0.000000e+00> : vector<8x324xf32>
    %13 = tpu.matmul %12, %11, %cst {dimension_numbers = #tpu.dot_dimension_numbers<[1], [0], [0], [1], [0, 0, 1, 1], [], []>} : vector<8x72xbf16>, vector<72x324xbf16>, vector<8x324xf32> -> vector<8x324xf32>
    %c0_4 = arith.constant 0 : index
    %c0_5 = arith.constant 0 : index
    %14 = vector.load %arg4[%c0_4, %c0_5] : memref<8x1xf32, #tpu.memory_space<vmem>>, vector<8x1xf32>
    %15 = vector.broadcast %14 : vector<8x1xf32> to vector<8x324xf32>
    %16 = arith.mulf %13, %15 : vector<8x324xf32>
    %c0_6 = arith.constant 0 : index
    %c0_7 = arith.constant 0 : index
    %17 = vector.load %arg5[%c0_6, %c0_7] : memref<8x1xf32, #tpu.memory_space<vmem>>, vector<8x1xf32>
    %18 = vector.broadcast %17 : vector<8x1xf32> to vector<8x324xf32>
    %19 = arith.addf %16, %18 : vector<8x324xf32>
    %cst_8 = arith.constant 0.000000e+00 : f32
    %20 = vector.broadcast %cst_8 : f32 to vector<8x324xf32>
    %21 = arith.maximumf %19, %20 : vector<8x324xf32>
    %c0_9 = arith.constant 0 : index
    %c0_10 = arith.constant 0 : index
    %22 = vector.load %arg9[%c0_9, %c0_10] : memref<1x324xf32, #tpu.memory_space<vmem>>, vector<1x324xf32>
    %23 = vector.broadcast %22 : vector<1x324xf32> to vector<8x324xf32>
    %24 = arith.mulf %21, %23 : vector<8x324xf32>
    %25 = arith.truncf %24 : vector<8x324xf32> to vector<8x324xbf16>
    %cst_11 = arith.constant 0.000000e+00 : bf16
    %26 = vector.broadcast %cst_11 : bf16 to vector<8x19xbf16>
    %27 = tpu.concatenate %26, %25, %26 in 1 : vector<8x19xbf16>, vector<8x324xbf16>, vector<8x19xbf16> -> vector<8x362xbf16>
    %28 = vector.extract_strided_slice %27 {offsets = [0, 0], sizes = [8, 324], strides = [1, 1]} : vector<8x362xbf16> to vector<8x324xbf16>
    %29 = vector.extract_strided_slice %27 {offsets = [0, 1], sizes = [8, 324], strides = [1, 1]} : vector<8x362xbf16> to vector<8x324xbf16>
    %30 = vector.extract_strided_slice %27 {offsets = [0, 2], sizes = [8, 324], strides = [1, 1]} : vector<8x362xbf16> to vector<8x324xbf16>
    %31 = vector.extract_strided_slice %27 {offsets = [0, 18], sizes = [8, 324], strides = [1, 1]} : vector<8x362xbf16> to vector<8x324xbf16>
    %32 = vector.extract_strided_slice %27 {offsets = [0, 19], sizes = [8, 324], strides = [1, 1]} : vector<8x362xbf16> to vector<8x324xbf16>
    %33 = vector.extract_strided_slice %27 {offsets = [0, 20], sizes = [8, 324], strides = [1, 1]} : vector<8x362xbf16> to vector<8x324xbf16>
    %34 = vector.extract_strided_slice %27 {offsets = [0, 36], sizes = [8, 324], strides = [1, 1]} : vector<8x362xbf16> to vector<8x324xbf16>
    %35 = vector.extract_strided_slice %27 {offsets = [0, 37], sizes = [8, 324], strides = [1, 1]} : vector<8x362xbf16> to vector<8x324xbf16>
    %36 = vector.extract_strided_slice %27 {offsets = [0, 38], sizes = [8, 324], strides = [1, 1]} : vector<8x362xbf16> to vector<8x324xbf16>
    %37 = tpu.concatenate %28, %29, %30, %31, %32, %33, %34, %35, %36 in 0 : vector<8x324xbf16>, vector<8x324xbf16>, vector<8x324xbf16>, vector<8x324xbf16>, vector<8x324xbf16>, vector<8x324xbf16>, vector<8x324xbf16>, vector<8x324xbf16>, vector<8x324xbf16> -> vector<72x324xbf16>
    %c0_12 = arith.constant 0 : index
    %c0_13 = arith.constant 0 : index
    %38 = vector.load %arg6[%c0_12, %c0_13] : memref<8x72xbf16, #tpu.memory_space<vmem>>, vector<8x72xbf16>
    %cst_14 = arith.constant dense<0.000000e+00> : vector<8x324xf32>
    %39 = tpu.matmul %38, %37, %cst_14 {dimension_numbers = #tpu.dot_dimension_numbers<[1], [0], [0], [1], [0, 0, 1, 1], [], []>} : vector<8x72xbf16>, vector<72x324xbf16>, vector<8x324xf32> -> vector<8x324xf32>
    %c0_15 = arith.constant 0 : index
    %c0_16 = arith.constant 0 : index
    %40 = vector.load %arg7[%c0_15, %c0_16] : memref<8x1xf32, #tpu.memory_space<vmem>>, vector<8x1xf32>
    %41 = vector.broadcast %40 : vector<8x1xf32> to vector<8x324xf32>
    %42 = arith.mulf %39, %41 : vector<8x324xf32>
    %c0_17 = arith.constant 0 : index
    %c0_18 = arith.constant 0 : index
    %43 = vector.load %arg8[%c0_17, %c0_18] : memref<8x1xf32, #tpu.memory_space<vmem>>, vector<8x1xf32>
    %44 = vector.broadcast %43 : vector<8x1xf32> to vector<8x324xf32>
    %45 = arith.addf %42, %44 : vector<8x324xf32>
    %c0_19 = arith.constant 0 : index
    %c0_20 = arith.constant 0 : index
    %c0_21 = arith.constant 0 : index
    %46 = vector.load %arg2[%c0_19, %c0_20, %c0_21] : memref<1x8x324xf32, #tpu.memory_space<vmem>>, vector<1x8x324xf32>
    %47 = vector.shape_cast %46 : vector<1x8x324xf32> to vector<8x324xf32>
    %48 = arith.addf %45, %47 : vector<8x324xf32>
    %cst_22 = arith.constant 0.000000e+00 : f32
    %49 = vector.broadcast %cst_22 : f32 to vector<8x324xf32>
    %50 = arith.maximumf %48, %49 : vector<8x324xf32>
    %c0_23 = arith.constant 0 : index
    %c0_24 = arith.constant 0 : index
    %c0_25 = arith.constant 0 : index
    %51 = vector.load %arg10[%c0_23, %c0_24, %c0_25] : memref<1x8x324xf32, #tpu.memory_space<vmem>>, vector<1x8x324xf32>
    %52 = vector.shape_cast %51 : vector<1x8x324xf32> to vector<8x324xf32>
    %53 = vector.shape_cast %50 : vector<8x324xf32> to vector<1x8x324xf32>
    tpu.vector_store %arg10[%c0_23, %c0_24, %c0_25], %53 {strides = array<i32>} : memref<1x8x324xf32, #tpu.memory_space<vmem>>, vector<1x8x324xf32>,
    return
  }
  func.func @transform_0(%arg0: i32) -> (i32, i32, i32) {
    %c0_i32 = arith.constant 0 : i32
    %c0_i32_0 = arith.constant 0 : i32
    %c0_i32_1 = arith.constant 0 : i32
    return %arg0, %c0_i32, %c0_i32_0 : i32, i32, i32
  }
  func.func @transform_1(%arg0: i32) -> (i32, i32, i32) {
    %c0_i32 = arith.constant 0 : i32
    %c0_i32_0 = arith.constant 0 : i32
    %c0_i32_1 = arith.constant 0 : i32
    return %arg0, %c0_i32, %c0_i32_0 : i32, i32, i32
  }
  func.func @transform_2(%arg0: i32) -> (i32, i32) {
    %c0_i32 = arith.constant 0 : i32
    %c0_i32_0 = arith.constant 0 : i32
    %c0_i32_1 = arith.constant 0 : i32
    return %c0_i32, %c0_i32_0 : i32, i32
  }
  func.func @transform_3(%arg0: i32) -> (i32, i32) {
    %c0_i32 = arith.constant 0 : i32
    %c0_i32_0 = arith.constant 0 : i32
    %c0_i32_1 = arith.constant 0 : i32
    return %c0_i32, %c0_i32_0 : i32, i32
  }
  func.func @transform_4(%arg0: i32) -> (i32, i32) {
    %c0_i32 = arith.constant 0 : i32
    %c0_i32_0 = arith.constant 0 : i32
    %c0_i32_1 = arith.constant 0 : i32
    return %c0_i32, %c0_i32_0 : i32, i32
  }
  func.func @transform_5(%arg0: i32) -> (i32, i32) {
    %c0_i32 = arith.constant 0 : i32
    %c0_i32_0 = arith.constant 0 : i32
    %c0_i32_1 = arith.constant 0 : i32
    return %c0_i32, %c0_i32_0 : i32, i32
  }
  func.func @transform_6(%arg0: i32) -> (i32, i32) {
    %c0_i32 = arith.constant 0 : i32
    %c0_i32_0 = arith.constant 0 : i32
    %c0_i32_1 = arith.constant 0 : i32
    return %c0_i32, %c0_i32_0 : i32, i32
  }
  func.func @transform_7(%arg0: i32) -> (i32, i32) {
    %c0_i32 = arith.constant 0 : i32
    %c0_i32_0 = arith.constant 0 : i32
    %c0_i32_1 = arith.constant 0 : i32
    return %c0_i32, %c0_i32_0 : i32, i32
  }
  func.func @transform_8(%arg0: i32) -> (i32, i32) {
    %c0_i32 = arith.constant 0 : i32
    %c0_i32_0 = arith.constant 0 : i32
    %c0_i32_1 = arith.constant 0 : i32
    return %c0_i32, %c0_i32_0 : i32, i32
  }
  func.func @transform_9(%arg0: i32) -> (i32, i32, i32) {
    %c0_i32 = arith.constant 0 : i32
    %c0_i32_0 = arith.constant 0 : i32
    %c0_i32_1 = arith.constant 0 : i32
    return %arg0, %c0_i32, %c0_i32_0 : i32, i32, i32
  }
}

</mosaic_0001>

<bundles_post_ra>
// kernel: tpu_custom_call.1
= control target key start
LH: loop header
LB: loop body
LE: loop exit
PB: predicated region body
PF: predicated region fallthrough
CT: control target
= control target key end

     0   :  { %14 = vsyncpa [#allocation3], 0  ;;  %s1606_s0 = inlined_call_operand.vmem [shape: bf16[2,8,362], index: 0, kind: input, shape index: {}]   ;;  %s1607_s1 = inlined_call_operand.hbm [shape: f32[2,8,324], index: 1, kind: input, shape index: {}]   ;;  %s1608_s2 = inlined_call_operand.vmem [shape: bf16[8,72], index: 2, kind: input, shape index: {}]   ;;  %s1609_s3 = inlined_call_operand.vmem [shape: f32[8,1], index: 3, kind: input, shape index: {}]   ;;  %s1610_s4 = inlined_call_operand.vmem [shape: f32[8,1], index: 4, kind: input, shape index: {}]   ;;  %s1611_s5 = inlined_call_operand.vmem [shape: bf16[8,72], index: 5, kind: input, shape index: {}]   ;;  %s1612_s6 = inlined_call_operand.vmem [shape: f32[8,1], index: 6, kind: input, shape index: {}]   ;;  %s1613_s7 = inlined_call_operand.vmem [shape: f32[8,1], index: 7, kind: input, shape index: {}]   ;;  %s1614_s8 = inlined_call_operand.vmem [shape: f32[1,324], index: 8, kind: input, shape index: {}]   ;;  %s1615_s9 = inlined_call_operand.hbm [shape: f32[2,8,324], index: 9, kind: output, shape index: {}]  }
   0x1   :  { %16 = vsyncpa [#allocation3 + $0x1], 0 }
   0x2   :  { %17 = vsyncpa [#allocation4], 0 }
   0x3   :  { %19 = vsyncpa [#allocation4 + $0x1], 0  ;;  %s1284_s30 = smov 0   ;;  %s1286_s10 = smov 0  }
   0x4   :  { %s1288_s11 = smov 0   ;;  %s1290_s12 = smov 0  }
   0x5 LB: > { %1619 = sst [smem:[#allocation8_spill]] %s1214_s11  ;;  %s1305_s13 = sadd.s32 4294967295, %s1218_s12   ;;  %s1218_s12 = sphi %s1290_s12, %s1635_s12   ;;  %s1214_s11 = sphi %s1288_s11, %s1632_s11   ;;  %s1210_s10 = sphi %s1286_s10, %s1634_s10   ;;  %s1206_s30 = sphi %s1284_s30, %s1633_s30  }
   0x6   : > { %s996_s14 = sadd.s32 4294967294, %s1218_s12   ;;  %s1309_s15 = sadd.s32 1, %s1218_s12  }
   0x7   : > { %s58_s16 = sadd.s32 1, %s1214_s11  ;;  %s55_s17 = ssub.s32 %s1218_s12, %s1309_s15 }
   0x8   : > { %p65_p0 = scmp.ne.s32.totalorder %s1214_s11, %s1210_s10  ;;  %p56_p1 = scmp.eq.s32.totalorder %s55_s17, 0 }
   0x9   : > { %p66_p2 = scmp.eq.s32.totalorder %s1218_s12, 0  ;;  %p71_p3 = scmp.ne.s32.totalorder %s1210_s10, %s1206_s30 }
   0xa   : > { %p72_p4 = scmp.eq.s32.totalorder %s1305_s13, 0  ;;  %p242_p7 = scmp.eq.s32.totalorder %s1305_s13, 1 }
   0xb   : > { %s1321_s18 = scalar_select %p56_p1, %s1214_s11, %s58_s16  }
   0xc   : > { %p67_p5 = por %p66_p2, %p65_p0  ;;  %p1323_p6 = por %p72_p4, %p71_p3 }
   0xd   : > { %1620 = sst [smem:[#allocation9_spill]] %s1321_s18  ;;  %p248_p8 = scmp.eq.s32.totalorder %s996_s14, 1 }
   0xe   : > { %p1071_p10 = scmp.lt.s32.totalorder %s1218_s12, 2  ;;  %p1330_p11 = por %p242_p7, %p65_p0 }
   0xf   : > { %p1334_p12 = por %p248_p8, %p71_p3  ;;  %s297_s22 = sand.u32 1, %s1214_s11  }
  0x10   : > { %s1622_s20 = scalar_select %p1330_p11, 1, 0 }
  0x11   : > { %s1623_s21 = scalar_select %p1334_p12, 1, 0 }
  0x12   : > { %s1055_s23 = smul.u32 384, %s1218_s12  ;;  %p1345_p13 = pnand %p1071_p10, %p67_p5 }
  0x13   : > { %s1054_s24 = smul.u32 24, %s297_s22  ;;  %s298_s16 = scalar_lea.sflag [#allocation3], %s297_s22 }
  0x14   : > { %s1343_s27 = scalar_lea.hbm %s1607_s1, %s1055_s23  ;;  %p1124_p3 = pneg %p1345_p13 }
  0x15   : > { %s301_s29 = scalar_lea.vmem [#allocation2], %s1054_s24  ;;  %s1122_s17 = scalar_lea.hbm %s1343_s27, 384 }
  0x16   : > { %s309_s14 = sshll.u32 %s301_s29, 4  ;;  %p1123_p2 = scmp.ne.s32.totalorder %s1343_s27, %s1122_s17  ;;  %s1350_s14 = int_to_ptr.vmem [resolvable:$true] %s309_s14 }
  0x17   : > { %s1127_s26 = scalar_lea.hbm %s1607_s1, 768  ;;  %p1128_p7 = scmp.lt.u32.totalorder %s1343_s27, %s1607_s1 }
  0x18   : > { %p1125_p4 = pnand %p1124_p3, %p1123_p2  ;;  %p1129_p8 = scmp.lt.u32.totalorder %s1127_s26, %s1122_s17 }
  0x19   : > { %p1131_p9 = scmp.lt.u32.totalorder %s1122_s17, %s1343_s27 }
  0x1a   : > { %p1126_p5 = pneg %p1125_p4  ;;  %p1130_p10 = por %p1129_p8, %p1128_p7 }
  0x1c   : > { %p1132_p0 = por %p1131_p9, %p1130_p10 }
  0x1e   : > { %p1133_p1 = pnand %p1132_p0, %p1126_p5 }
  0x20   : > { %1136 = shalt.err (!%p1133_p1)
}
  0x21   : > { %s1137_s22 = scalar_lea.vmem %s1350_s14, 384  ;;  %s1220_s24 = smov [#allocation2]  }
  0x22   : > { %p1138_p2 = scmp.ne.s32.totalorder %s1350_s14, %s1137_s22  ;;  %s1142_s29 = sshll.u32 %s1220_s24, 4  ;;  %s1143_s29 = int_to_ptr.vmem [resolvable:$false] %s1142_s29 }
  0x23   : > { %s1144_s11 = scalar_lea.vmem %s1143_s29, 768  ;;  %p1145_p11 = scmp.lt.s32.totalorder %s1350_s14, %s1143_s29 }
  0x24   : > { %p1140_p4 = pnand %p1138_p2, %p1124_p3  ;;  %p1146_p7 = scmp.lt.s32.totalorder %s1144_s11, %s1137_s22 }
  0x26   : > { %p1141_p12 = pneg %p1140_p4  ;;  %p1147_p8 = por %p1146_p7, %p1145_p11 }
  0x28   : > { %p1148_p9 = pnand %p1147_p8, %p1141_p12 }
  0x2a   : > { %1151 = shalt.err (!%p1148_p9)
}
  0x2b   : > { %1066 = dma.hbm_to_vmem [thread:$0]  (!%p1345_p13), %s1343_s27, 384, %s1350_s14, %s298_s16  }
  0x2c   : > { %p1625_p0 = scmp.lt.s32.totalorder %s1218_s12, 3  ;;  %p1626_p1 = scmp.ge.s32.totalorder %s1218_s12, 1 }
  0x2e   : > { %p315_p3 = pnand %p1626_p1, %p1625_p0 }
  0x2f   : > { %s1383_s18 = sand.u32 (!%p315_p3), 1, %s1210_s10  }
  0x30   : > { %318 = sbr.rel (%p315_p3) target bundleno = 974 (0x3ce), region = 56  ;;  %s321_s23 = scalar_lea.sflag (!%p315_p3), [#allocation3], %s1383_s18 }
  0x31   : > { %s1618_s17 = smul.u32 (!%p315_p3), 24, %s1383_s18 }
  0x33   : > { %s1389_s28 = scalar_lea.vmem (!%p315_p3), [#allocation2], %s1618_s17 }
  0x37   : > { %1197 = dma.done.wait (%p1323_p6), %s321_s23, 384  }
  0x38   : > { %1199 = vsyncadd (%p1323_p6), %s321_s23, 4294966912  ;;  %p364_p11 = scmp.lt.s32.totalorder %s1305_s13, 1  ;;  %v1221_v0 = vmov 0.0   ;;  %s1222_s22 = smov 127   ;;  %v1229_v5 = vmov 0   ;;  %vm1230_vm0 = vmmov 0   ;;  %v619_v63 = vlaneseq }
  0x39   : > { %1026 = vmatprep.subr.bf16.mxu1 %v1221_v0  ;;  %s1223_s19 = smov 126   ;;  %s1224_s24 = smov 110   ;;  %547 = vmatprep.mubr.bf16.mxu0 %v1229_v5  ;;  %v596_v6 = vld [vmem:[%s1609_s3] sm:$0xff]  ;;  %vm386_vm1 = vcmask 1039360   ;;  %vm452_vm2 = vcmask 1043456   ;;  %vm395_vm3 = vcmask 1031168  }
  0x3a   : > { %s365_s27 = scalar_select %p364_p11, %s1305_s13, 1  ;;  %1117 = vset.pattern.permute.xlu0 %v1229_v5  ;;  %1118 = vset.pattern.permute.xlu1 %v1229_v5  ;;  %v605_v7 = vld [vmem:[%s1610_s4] sm:$0xff]  ;;  %vm404_vm4 = vcmask 900096   ;;  %vm413_vm5 = vcmask 891904   ;;  %vm422_vm6 = vcmask 883712   ;;  %vm431_vm7 = vcmask 752640  }
  0x3b   : > { %s1225_s29 = smov 109   ;;  %s1226_s11 = smov 108   ;;  %1036 = vmatprep.mubr.msk.bf16.mxu1 %vm1230_vm0, %v1221_v0  ;;  %vm440_vm8 = vcmask 744448   ;;  %vm449_vm9 = vcmask 736256   ;;  %v501_v62 = vld [vmem:[%s1608_s2] sm:$0xf] }
  0x3c   : > { %s1057_s14 = smul.u32 12, %s365_s27  ;;  %s1227_s23 = smov 92   ;;  %vm502_vm10 = vcmask 588800   ;;  %vm649_vm11 = vcmask 154624   ;;  %vm656_vm12 = vcmask 711680   ;;  %vm897_vm13 = vcmask 556032  }
  0x3d   : > { %s1228_s27 = smov 91   ;;  %s1232_s17 = smov 19  }
  0x3e   : > { %s368_s26 = scalar_lea.vmem %s1606_s0, %s1057_s14  ;;  %s1231_s14 = smov 90  }
  0x3f   : > { %v370_v1 = vld [vmem:[%s368_s26] sm:$0xff]  ;;  %v1121_v4 = vld [vmem:[%s368_s26 + $0x8] ss:$0 sps:$4 sm:$0xff]   ;;  %p1628_p12 = scmp.ne.s32.totalorder %s1622_s20, 0 }
  0x40   : > { %v1003_v2 = vcombine.high %v370_v1, %v370_v1  ;;  %v1002_v3 = vcombine.low %v370_v1, %v370_v1  ;;  %v620_v1 = vshrl.u32 %v619_v63, 7 }
  0x42   : > { %382 = vrot.lane.b32.xlu0 %v1003_v2, %s1222_s22  ;;  %380 = vrot.lane.b32.xlu1 %v1002_v3, %s1222_s22 }
  0x46   : > { %384 = vrot.lane.b32.xlu0 %v1121_v4, %s1222_s22  ;;  %391 = vrot.lane.b32.xlu1 %v1003_v2, %s1223_s19 }
  0x4a   : > { %393 = vrot.lane.b32.xlu0 %v1121_v4, %s1223_s19  ;;  %400 = vrot.lane.b32.xlu1 %v1003_v2, %s1224_s24 }
  0x4e   : > { %402 = vrot.lane.b32.xlu0 %v1121_v4, %s1224_s24  ;;  %389 = vrot.lane.b32.xlu1 %v1002_v3, %s1223_s19 }
  0x52   : > { %398 = vrot.lane.b32.xlu0 %v1002_v3, %s1224_s24  ;;  %409 = vrot.lane.b32.xlu1 %v1003_v2, %s1225_s29 }
  0x56   : > { %411 = vrot.lane.b32.xlu0 %v1121_v4, %s1225_s29  ;;  %418 = vrot.lane.b32.xlu1 %v1003_v2, %s1226_s11 }
  0x5a   : > { %420 = vrot.lane.b32.xlu0 %v1121_v4, %s1226_s11  ;;  %407 = vrot.lane.b32.xlu1 %v1002_v3, %s1225_s29 }
  0x5e   : > { %416 = vrot.lane.b32.xlu0 %v1002_v3, %s1226_s11  ;;  %427 = vrot.lane.b32.xlu1 %v1003_v2, %s1227_s23 }
  0x62   : > { %429 = vrot.lane.b32.xlu0 %v1121_v4, %s1227_s23  ;;  %436 = vrot.lane.b32.xlu1 %v1003_v2, %s1228_s27 }
  0x66   : > { %438 = vrot.lane.b32.xlu0 %v1121_v4, %s1228_s27  ;;  %425 = vrot.lane.b32.xlu1 %v1002_v3, %s1227_s23 }
  0x6a   : > { %434 = vrot.lane.b32.xlu0 %v1002_v3, %s1228_s27  ;;  %443 = vrot.lane.b32.xlu1 %v1002_v3, %s1231_s14 }
  0x6e   : > { %445 = vrot.lane.b32.xlu0 %v1003_v2, %s1231_s14  ;;  %447 = vrot.lane.b32.xlu1 %v1121_v4, %s1231_s14 }
  0x72   : > { %599 = vperm.xlu0 %1117, %v596_v6   ;;  %608 = vperm.xlu1 %1118, %v605_v7   ;;  %v617_v7 = vld [vmem:[%s1614_s8] sm:$0x7] }
  0xb4   : > { %v383_v8 = vpop.permute.xlu0 %382  ;;  %v381_v9 = vpop.permute.xlu1 %380 }
  0xb5   : > { %v387_v10 = vsel %vm386_vm1, %v381_v9, %v383_v8 }
  0xb6   : > { %v455_v16 = vsel %vm452_vm2, %v1002_v3, %v387_v10  ;;  %v629_v3 = vsub.s32 2, %v620_v1 }
  0xb8   : > { %v385_v11 = vpop.permute.xlu0 %384  ;;  %v392_v12 = vpop.permute.xlu1 %391 }
  0xb9   : > { %v388_v13 = vsel %vm386_vm1, %v383_v8, %v385_v11  ;;  %v463_v14 = vsel %vm452_vm2, %v1121_v4, %v385_v11  ;;  %v625_v11 = vsub.s32 1, %v620_v1 }
  0xba   : > { %1027 = vmatpush3.bf16.msra.mxu1 %v463_v14  ;;  %v459_v15 = vsel %vm452_vm2, %v1003_v2, %v388_v13 }
  0xbb   : > { %515 = vmatprep.subr.bf16.mxu0 %v459_v15  ;;  %1028 = vmatprep.subr.bf16.mxu1 %v1221_v0 }
  0xbc   : > { %v394_v17 = vpop.permute.xlu0 %393  ;;  %516 = vmatpush1.bf16.msra.mxu0 %v455_v16  ;;  %v401_v18 = vpop.permute.xlu1 %400 }
  0xbd   : > { %v397_v21 = vsel %vm395_vm3, %v392_v12, %v394_v17 }
  0xc0   : > { %v403_v19 = vpop.permute.xlu0 %402  ;;  %v390_v20 = vpop.permute.xlu1 %389 }
  0xc1   : > { %v406_v22 = vsel %vm404_vm4, %v401_v18, %v403_v19  ;;  %v475_v23 = vsel %vm452_vm2, %v394_v17, %v403_v19  ;;  %v396_v27 = vsel %vm395_vm3, %v390_v20, %v392_v12  ;;  %v621_v19 = vsub.s32 0, %v620_v1 }
  0xc2   : > { %1029 = vmatpush3.bf16.msra.mxu1 %v475_v23  ;;  %v471_v24 = vsel %vm452_vm2, %v397_v21, %v406_v22 }
  0xc3   : > { %517 = vmatprep.subr.bf16.mxu0 %v471_v24  ;;  %1030 = vmatprep.subr.bf16.mxu1 %v1221_v0  ;;  %v626_v24 = vrot.slane %v617_v7, %v625_v11 }
  0xc4   : > { %v399_v25 = vpop.permute.xlu0 %398  ;;  %v410_v26 = vpop.permute.xlu1 %409 }
  0xc5   : > { %v405_v28 = vsel %vm404_vm4, %v399_v25, %v401_v18  ;;  %v630_v18 = vrot.slane %v617_v7, %v629_v3 }
  0xc6   : > { %v467_v29 = vsel %vm452_vm2, %v396_v27, %v405_v28  ;;  %v622_v28 = vrot.slane %v617_v7, %v621_v19 }
  0xc7   : > { %518 = vmatpush1.bf16.msra.mxu0 %v467_v29 }
  0xc8   : > { %v412_v30 = vpop.permute.xlu0 %411  ;;  %v419_v31 = vpop.permute.xlu1 %418 }
  0xc9   : > { %v415_v34 = vsel %vm413_vm5, %v410_v26, %v412_v30 }
  0xcc   : > { %v421_v32 = vpop.permute.xlu0 %420  ;;  %v408_v33 = vpop.permute.xlu1 %407 }
  0xcd   : > { %v424_v35 = vsel %vm422_vm6, %v419_v31, %v421_v32  ;;  %v487_v36 = vsel %vm452_vm2, %v412_v30, %v421_v32  ;;  %v414_v40 = vsel %vm413_vm5, %v408_v33, %v410_v26 }
  0xce   : > { %1031 = vmatpush3.bf16.msra.mxu1 %v487_v36  ;;  %v483_v37 = vsel %vm452_vm2, %v415_v34, %v424_v35 }
  0xcf   : > { %519 = vmatprep.subr.bf16.mxu0 %v483_v37  ;;  %1032 = vmatprep.subr.bf16.mxu1 %v1221_v0 }
  0xd0   : > { %v417_v38 = vpop.permute.xlu0 %416  ;;  %v428_v39 = vpop.permute.xlu1 %427 }
  0xd1   : > { %v423_v41 = vsel %vm422_vm6, %v417_v38, %v419_v31 }
  0xd2   : > { %v479_v42 = vsel %vm452_vm2, %v414_v40, %v423_v41 }
  0xd3   : > { %520 = vmatpush1.bf16.msra.mxu0 %v479_v42 }
  0xd4   : > { %v430_v43 = vpop.permute.xlu0 %429  ;;  %v437_v44 = vpop.permute.xlu1 %436 }
  0xd5   : > { %v433_v47 = vsel %vm431_vm7, %v428_v39, %v430_v43 }
  0xd8   : > { %v439_v45 = vpop.permute.xlu0 %438  ;;  %v426_v46 = vpop.permute.xlu1 %425 }
  0xd9   : > { %v442_v48 = vsel %vm440_vm8, %v437_v44, %v439_v45  ;;  %v499_v49 = vsel %vm452_vm2, %v430_v43, %v439_v45  ;;  %v432_v53 = vsel %vm431_vm7, %v426_v46, %v428_v39  ;;  %v868_v45 = vld [vmem:[%s1612_s6] sm:$0xff] }
  0xda   : > { %1033 = vmatpush3.bf16.msra.mxu1 %v499_v49  ;;  %v495_v50 = vsel %vm452_vm2, %v433_v47, %v442_v48 }
  0xdb   : > { %521 = vmatprep.subr.bf16.mxu0 %v495_v50  ;;  %1034 = vmatprep.subr.bf16.mxu1 %v1221_v0 }
  0xdc   : > { %v435_v51 = vpop.permute.xlu0 %434  ;;  %v444_v52 = vpop.permute.xlu1 %443 }
  0xdd   : > { %v441_v54 = vsel %vm440_vm8, %v435_v51, %v437_v44  ;;  %v877_v44 = vld [vmem:[%s1613_s7] sm:$0xff] }
  0xde   : > { %v491_v55 = vsel %vm452_vm2, %v432_v53, %v441_v54 }
  0xdf   : > { %522 = vmatpush1.bf16.msra.mxu0 %v491_v55 }
  0xe0   : > { %v446_v56 = vpop.permute.xlu0 %445  ;;  %v448_v57 = vpop.permute.xlu1 %447 }
  0xe1   : > { %v450_v58 = vsel %vm449_vm9, %v444_v52, %v446_v56  ;;  %v451_v59 = vsel %vm449_vm9, %v446_v56, %v448_v57  ;;  %v513_v60 = vsel %vm452_vm2, %v448_v57, 0 }
  0xe2   : > { %1005 = vmatprep.subr.msk.bf16.mxu0 %vm452_vm2, %v451_v59  ;;  %1035 = vmatpush3.bf16.msra.mxu1 %v513_v60  ;;  %v507_v61 = vsel %vm452_vm2, %v450_v58, 0 }
  0xe3   : > { %524 = vmatpush1.bf16.msra.mxu0 %v507_v61  ;;  %1040 = vmatprep.subr.bf16.mxu1 %v1221_v0 }
  0xe5   : > { %1037 = vmatmul.mubr.msk.bf16.vlgmr.msra.gmra.mrb[0].mxu1 %vm502_vm10, %v501_v62 }
  0xe6   : > { %1006 = vmatmul.mubr.msk.bf16.vlgmr.msra.gmra.mrb[0].mxu0 %vm502_vm10, %v501_v62  ;;  %1050 = vmatprep.mubr.msk.bf16.mxu1 %vm1230_vm0, %v1221_v0 }
  0xe7   : > { %819 = vmatprep.mubr.bf16.mxu0 %v1229_v5 }
  0xf1   : > { %v600_v2 = vpop.permute.xlu0 %599  ;;  %v609_v6 = vpop.permute.xlu1 %608 }
 0x1b8   : > { %v590_v4 = vpop.f32.mrb[0].mxu1 }
 0x1b9   : > { %v549_v8 = vpop.f32.mrb[0].mxu0  ;;  %v604_v9 = vmul.f32 %v600_v2, %v590_v4  ;;  %v1038_v10 = vpop.f32.mrb[1].mxu1 }
 0x1ba   : > { %v602_v12 = vmul.f32 %v600_v2, %v549_v8  ;;  %v551_v13 = vpop.f32.mrb[1].mxu0  ;;  %v593_v14 = vpop.f32.mrb[2].mxu1 }
 0x1bb   : > { %v603_v15 = vmul.f32 %v600_v2, %v551_v13  ;;  %v553_v16 = vpop.f32.mrb[2].mxu0  ;;  %v613_v5 = vadd.f32 %v609_v6, %v604_v9  ;;  %v1039_v17 = vpop.f32.mrb[3].mxu1 }
 0x1bc   : > { %v611_v20 = vadd.f32 %v609_v6, %v602_v12  ;;  %v554_v21 = vpop.f32.mrb[3].mxu0 }
 0x1bd   : > { %v612_v22 = vadd.f32 %v609_v6, %v603_v15  ;;  %v616_v23 = vmax.f32 %v613_v5, 0.0 }
 0x1be   : > { %v614_v25 = vmax.f32 %v611_v20, 0.0 }
 0x1bf   : > { %v615_v26 = vmax.f32 %v612_v22, 0.0  ;;  %v636_v27 = vmul.f32 %v630_v18, %v616_v23 }
 0x1c0   : > { %v634_v32 = vmul.f32 %v622_v28, %v614_v25 }
 0x1c1   : > { %v639_v29 = vpack.c.bf16 %v636_v27, %v636_v27  ;;  %v635_v30 = vmul.f32 %v626_v24, %v615_v26 }
 0x1c2   : > { %v637_v33 = vpack.c.bf16 %v634_v32, %v634_v32 }
 0x1c3   : > { %647 = vrot.lane.b32.xlu0 %v639_v29, %s1232_s17  ;;  %v638_v31 = vpack.c.bf16 %v635_v30, %v635_v30 }
 0x1c5   : > { %645 = vrot.lane.b32.xlu1 %v638_v31, %s1232_s17 }
 0x1c9   : > { %643 = vrot.lane.b32.xlu1 %v637_v33, %s1232_s17 }
 0x235   : > { %v648_v36 = vpop.permute.xlu0 %647 }
 0x237   : > { %v646_v34 = vpop.permute.xlu1 %645 }
 0x238   : > { %v651_v39 = vsel %vm649_vm11, %v646_v34, %v648_v36 }
 0x239   : > { %v658_v40 = vsel %vm656_vm12, %v651_v39, 0 }
 0x23a   : > { %v663_v43 = vrot.slane %v658_v40, 4 }
 0x23b   : > { %v644_v35 = vpop.permute.xlu1 %643 }
 0x23c   : > { %v655_v37 = vsel %vm649_vm11, 0, %v644_v35  ;;  %v650_v41 = vsel %vm649_vm11, %v644_v35, %v646_v34  ;;  %v774_v34 = vld [vmem:[%s1611_s5] sm:$0xf] }
 0x23d   : > { %672 = vrot.lane.b32.xlu1 %v655_v37, %s1223_s19  ;;  %v661_v38 = vrot.slane %v655_v37, 4  ;;  %v662_v42 = vrot.slane %v650_v41, 4 }
 0x23f   : > { %664 = vrot.lane.b32.xlu0 %v661_v38, %s1222_s22 }
 0x241   : > { %688 = vrot.lane.b32.xlu1 %v655_v37, %s1225_s29 }
 0x243   : > { %676 = vrot.lane.b32.xlu0 %v658_v40, %s1223_s19 }
 0x245   : > { %674 = vrot.lane.b32.xlu1 %v650_v41, %s1223_s19  ;;  %s1233_s19 = smov [#allocation5]  }
 0x247   : > { %680 = vrot.lane.b32.xlu0 %v661_v38, %s1224_s24 }
 0x249   : > { %690 = vrot.lane.b32.xlu1 %v650_v41, %s1225_s29 }
 0x24b   : > { %692 = vrot.lane.b32.xlu0 %v658_v40, %s1225_s29 }
 0x24d   : > { %682 = vrot.lane.b32.xlu1 %v662_v42, %s1224_s24 }
 0x24f   : > { %696 = vrot.lane.b32.xlu0 %v661_v38, %s1226_s11 }
 0x251   : > { %698 = vrot.lane.b32.xlu1 %v662_v42, %s1226_s11 }
 0x253   : > { %666 = vrot.lane.b32.xlu0 %v662_v42, %s1222_s22 }
 0x255   : > { %668 = vrot.lane.b32.xlu1 %v663_v43, %s1222_s22 }
 0x257   : > { %708 = vrot.lane.b32.xlu0 %v658_v40, %s1227_s23 }
 0x259   : > { %706 = vrot.lane.b32.xlu1 %v650_v41, %s1227_s23 }
 0x25b   : > { %684 = vrot.lane.b32.xlu0 %v663_v43, %s1224_s24  ;;  %s1156_s24 = sshll.u32 %s1233_s19, 4  ;;  %s1157_s24 = int_to_ptr.vmem [resolvable:$false] %s1156_s24 }
 0x25c   : > { %s1158_s29 = scalar_lea.vmem %s1157_s24, 768 }
 0x25d   : > { %714 = vrot.lane.b32.xlu1 %v662_v42, %s1228_s27  ;;  %v888_v42 = vld [vmem:[%s1389_s28 + $0x10] sm:$0xff] }
 0x25f   : > { %700 = vrot.lane.b32.xlu0 %v663_v43, %s1226_s11 }
 0x261   : > { %704 = vrot.lane.b32.xlu1 %v655_v37, %s1227_s23 }
 0x263   : > { %716 = vrot.lane.b32.xlu0 %v663_v43, %s1228_s27 }
 0x265   : > { %720 = vrot.lane.b32.xlu1 %v655_v37, %s1231_s14 }
 0x267   : > { %712 = vrot.lane.b32.xlu0 %v661_v38, %s1228_s27  ;;  %s1058_s27 = smul.u32 384, %s1305_s13  ;;  %s900_s13 = scalar_lea.sflag [#allocation4], %s1383_s18 }
 0x269   : > { %724 = vrot.lane.b32.xlu1 %v658_v40, %s1231_s14  ;;  %s1562_s22 = scalar_lea.hbm %s1615_s9, %s1058_s27 }
 0x26b   : > { %722 = vrot.lane.b32.xlu0 %v650_v41, %s1231_s14  ;;  %s1627_s14 = smul.u32 24, %s1383_s18 }
 0x26d   : > { %880 = vperm.xlu1 %1118, %v877_v44   ;;  %s363_s16 = scalar_lea.vmem [#allocation5], %s1627_s14 }
 0x26e   : > { %s914_s25 = sshll.u32 %s363_s16, 4  ;;  %s1564_s25 = int_to_ptr.vmem [resolvable:$true] %s914_s25 }
 0x26f   : > { %871 = vperm.xlu0 %1117, %v868_v45   ;;  %p1159_p10 = scmp.lt.s32.totalorder %s1564_s25, %s1157_s24 }
 0x2af   : > { %v673_v46 = vpop.permute.xlu1 %672 }
 0x2b1   : > { %v665_v47 = vpop.permute.xlu0 %664 }
 0x2b3   : > { %v689_v48 = vpop.permute.xlu1 %688 }
 0x2b5   : > { %v677_v49 = vpop.permute.xlu0 %676 }
 0x2b7   : > { %v675_v50 = vpop.permute.xlu1 %674 }
 0x2b8   : > { %v679_v6 = vsel %vm395_vm3, %v675_v50, %v677_v49  ;;  %v678_v9 = vsel %vm395_vm3, %v673_v46, %v675_v50  ;;  %v886_v50 = vld [vmem:[%s1389_s28] sm:$0xff] }
 0x2b9   : > { %v681_v51 = vpop.permute.xlu0 %680 }
 0x2bb   : > { %v691_v52 = vpop.permute.xlu1 %690 }
 0x2bc   : > { %v694_v17 = vsel %vm413_vm5, %v689_v48, %v691_v52 }
 0x2bd   : > { %v693_v53 = vpop.permute.xlu0 %692 }
 0x2be   : > { %v695_v15 = vsel %vm413_vm5, %v691_v52, %v693_v53 }
 0x2bf   : > { %v683_v54 = vpop.permute.xlu1 %682 }
 0x2c0   : > { %v686_v3 = vsel %vm404_vm4, %v681_v51, %v683_v54 }
 0x2c1   : > { %v697_v55 = vpop.permute.xlu0 %696  ;;  %v740_v12 = vsel %vm452_vm2, %v678_v9, %v686_v3 }
 0x2c3   : > { %v699_v56 = vpop.permute.xlu1 %698 }
 0x2c4   : > { %v702_v13 = vsel %vm422_vm6, %v697_v55, %v699_v56 }
 0x2c5   : > { %v667_v57 = vpop.permute.xlu0 %666  ;;  %v752_v20 = vsel %vm452_vm2, %v694_v17, %v702_v13 }
 0x2c6   : > { %v670_v58 = vsel %vm386_vm1, %v665_v47, %v667_v57 }
 0x2c7   : > { %v669_v59 = vpop.permute.xlu1 %668  ;;  %v729_v1 = vsel %vm452_vm2, %v655_v37, %v670_v58 }
 0x2c8   : > { %v671_v60 = vsel %vm386_vm1, %v667_v57, %v669_v59  ;;  %v736_v61 = vsel %vm452_vm2, %v658_v40, %v669_v59 }
 0x2c9   : > { %1041 = vmatpush3.bf16.msra.mxu1 %v736_v61  ;;  %v709_v62 = vpop.permute.xlu0 %708  ;;  %v733_v63 = vsel %vm452_vm2, %v650_v41, %v671_v60 }
 0x2ca   : > { %787 = vmatprep.subr.bf16.mxu0 %v733_v63  ;;  %1042 = vmatprep.subr.bf16.mxu1 %v1221_v0 }
 0x2cb   : > { %v707_v2 = vpop.permute.xlu1 %706  ;;  %788 = vmatpush1.bf16.msra.mxu0 %v729_v1 }
 0x2cc   : > { %v711_v22 = vsel %vm431_vm7, %v707_v2, %v709_v62 }
 0x2cd   : > { %v685_v4 = vpop.permute.xlu0 %684 }
 0x2ce   : > { %v687_v7 = vsel %vm404_vm4, %v683_v54, %v685_v4  ;;  %v748_v8 = vsel %vm452_vm2, %v677_v49, %v685_v4  ;;  %v887_v54 = vld [vmem:[%s1389_s28 + $0x8] sm:$0xff]  ;;  %s1152_s28 = scalar_lea.vmem %s1564_s25, 384 }
 0x2cf   : > { %v715_v10 = vpop.permute.xlu1 %714  ;;  %1043 = vmatpush3.bf16.msra.mxu1 %v748_v8  ;;  %v744_v11 = vsel %vm452_vm2, %v679_v6, %v687_v7  ;;  %p1153_p6 = scmp.ne.s32.totalorder %s1564_s25, %s1152_s28  ;;  %p1160_p2 = scmp.lt.s32.totalorder %s1158_s29, %s1152_s28 }
 0x2d0   : > { %789 = vmatprep.subr.bf16.mxu0 %v744_v11  ;;  %1044 = vmatprep.subr.bf16.mxu1 %v1221_v0 }
 0x2d1   : > { %790 = vmatpush1.bf16.msra.mxu0 %v740_v12  ;;  %v701_v14 = vpop.permute.xlu0 %700  ;;  %p1154_p13 = pnand %p1153_p6, %p1628_p12  ;;  %p1161_p4 = por %p1160_p2, %p1159_p10 }
 0x2d2   : > { %v703_v16 = vsel %vm422_vm6, %v699_v56, %v701_v14  ;;  %v760_v5 = vsel %vm452_vm2, %v693_v53, %v701_v14 }
 0x2d3   : > { %v705_v18 = vpop.permute.xlu1 %704  ;;  %1045 = vmatpush3.bf16.msra.mxu1 %v760_v5  ;;  %v756_v19 = vsel %vm452_vm2, %v695_v15, %v703_v16  ;;  %p1155_p5 = pneg %p1154_p13 }
 0x2d4   : > { %791 = vmatprep.subr.bf16.mxu0 %v756_v19  ;;  %1046 = vmatprep.subr.bf16.mxu1 %v1221_v0  ;;  %v710_v28 = vsel %vm431_vm7, %v705_v18, %v707_v2 }
 0x2d5   : > { %792 = vmatpush1.bf16.msra.mxu0 %v752_v20  ;;  %v717_v21 = vpop.permute.xlu0 %716  ;;  %p1162_p7 = pnand %p1161_p4, %p1155_p5 }
 0x2d6   : > { %v719_v23 = vsel %vm440_vm8, %v715_v10, %v717_v21  ;;  %v772_v24 = vsel %vm452_vm2, %v709_v62, %v717_v21 }
 0x2d7   : > { %v721_v25 = vpop.permute.xlu1 %720  ;;  %1047 = vmatpush3.bf16.msra.mxu1 %v772_v24  ;;  %v768_v26 = vsel %vm452_vm2, %v711_v22, %v719_v23 }
 0x2d8   : > { %793 = vmatprep.subr.bf16.mxu0 %v768_v26  ;;  %1048 = vmatprep.subr.bf16.mxu1 %v1221_v0 }
 0x2d9   : > { %v713_v27 = vpop.permute.xlu0 %712 }
 0x2da   : > { %v718_v29 = vsel %vm440_vm8, %v713_v27, %v715_v10 }
 0x2db   : > { %v725_v30 = vpop.permute.xlu1 %724  ;;  %v764_v31 = vsel %vm452_vm2, %v710_v28, %v718_v29 }
 0x2dc   : > { %v785_v32 = vsel %vm452_vm2, %v725_v30, 0  ;;  %794 = vmatpush1.bf16.msra.mxu0 %v764_v31 }
 0x2dd   : > { %1049 = vmatpush3.bf16.msra.mxu1 %v785_v32  ;;  %v723_v33 = vpop.permute.xlu0 %722 }
 0x2de   : > { %v726_v0 = vsel %vm449_vm9, %v721_v25, %v723_v33  ;;  %v727_v35 = vsel %vm449_vm9, %v723_v33, %v725_v30 }
 0x2df   : > { %v779_v36 = vsel %vm452_vm2, %v726_v0, 0  ;;  %1008 = vmatprep.subr.msk.bf16.mxu0 %vm452_vm2, %v727_v35 }
 0x2e0   : > { %796 = vmatpush1.bf16.msra.mxu0 %v779_v36  ;;  %1051 = vmatmul.mubr.msk.bf16.vlgmr.msra.gmra.mrb[4].mxu1 %vm502_vm10, %v774_v34 }
 0x2e3   : > { %1009 = vmatmul.mubr.msk.bf16.vlgmr.msra.gmra.mrb[4].mxu0 %vm502_vm10, %v774_v34 }
 0x2ec   : > { %v881_v41 = vpop.permute.xlu1 %880 }
 0x2ee   : > { %v872_v37 = vpop.permute.xlu0 %871 }
 0x3b3   : > { %v862_v38 = vpop.f32.mrb[4].mxu1 }
 0x3b4   : > { %v876_v39 = vmul.f32 %v872_v37, %v862_v38  ;;  %v1052_v40 = vpop.f32.mrb[5].mxu1 }
 0x3b5   : > { %v865_v43 = vpop.f32.mrb[6].mxu1 }
 0x3b6   : > { %v885_v44 = vadd.f32 %v881_v41, %v876_v39  ;;  %v821_v45 = vpop.f32.mrb[4].mxu0  ;;  %v1053_v46 = vpop.f32.mrb[7].mxu1 }
 0x3b7   : > { %v874_v47 = vmul.f32 %v872_v37, %v821_v45  ;;  %v823_v48 = vpop.f32.mrb[5].mxu0 }
 0x3b8   : > { %v891_v49 = vadd.f32 %v888_v42, %v885_v44  ;;  %v875_v51 = vmul.f32 %v872_v37, %v823_v48  ;;  %v825_v52 = vpop.f32.mrb[6].mxu0 }
 0x3b9   : > { %v883_v53 = vadd.f32 %v881_v41, %v874_v47  ;;  %v826_v55 = vpop.f32.mrb[7].mxu0 }
 0x3ba   : > { %v894_v56 = vmax.f32 %v891_v49, 0.0  ;;  %v884_v57 = vadd.f32 %v881_v41, %v875_v51 }
 0x3bb   : > { %v889_v58 = vadd.f32 %v886_v50, %v883_v53 }
 0x3bc   : > { %v890_v59 = vadd.f32 %v887_v54, %v884_v57  ;;  %898 = vst.msk [vmem:[%s363_s16 + $0x10] sm:$0xff] %vm897_vm13, %v894_v56 }
 0x3bd   : > { %v892_v60 = vmax.f32 %v889_v58, 0.0 }
 0x3be   : > { %v893_v61 = vmax.f32 %v890_v59, 0.0 }
 0x3bf   : > { %895 = vst [vmem:[%s363_s16] sm:$0xff] %v892_v60 }
 0x3c0   : > { %896 = vst [vmem:[%s363_s16 + $0x8] sm:$0xff] %v893_v61 }
 0x3c1   : > { %1165 = shalt.err (!%p1162_p7)
}
 0x3c2   : > { %s1166_s18 = scalar_lea.hbm %s1562_s22, 384  ;;  %s1170_s27 = scalar_lea.hbm %s1615_s9, 768 }
 0x3c3   : > { %p1167_p8 = scmp.ne.s32.totalorder %s1562_s22, %s1166_s18  ;;  %p1171_p1 = scmp.lt.u32.totalorder %s1562_s22, %s1615_s9 }
 0x3c4   : > { %p1172_p3 = scmp.lt.u32.totalorder %s1170_s27, %s1166_s18  ;;  %p1174_p6 = scmp.lt.u32.totalorder %s1166_s18, %s1562_s22 }
 0x3c5   : > { %p1168_p9 = pnand %p1167_p8, %p1628_p12 }
 0x3c6   : > { %p1173_p11 = por %p1172_p3, %p1171_p1 }
 0x3c7   : > { %p1169_p0 = pneg %p1168_p9 }
 0x3c8   : > { %p1175_p13 = por %p1174_p6, %p1173_p11 }
 0x3ca   : > { %p1176_p5 = pnand %p1175_p13, %p1169_p0 }
 0x3cc   : > { %1179 = shalt.err (!%p1176_p5)
}
 0x3cd   : > { %1061 = dma.vmem_to_hbm [thread:$0]  (%p1628_p12), %s1564_s25, 384, %s1562_s22, %s900_s13  }
 0x3ce PF: > { %s926_s26 = sand.u32 1, %s1206_s30   ;;  %p1629_p10 = scmp.ne.s32.totalorder %s1623_s21, 0 }
 0x3cf   : > { %p1630_p2 = scmp.ge.s32.totalorder %s1218_s12, 2  ;;  %s927_s17 = scalar_lea.sflag [#allocation4], %s926_s26 }
 0x3d1   : > { %p1068_p4 = pnand %p1630_p2, %p1629_p10 }
 0x3d3   : > { %1201 = dma.done.wait (!%p1068_p4), %s927_s17, 384  }
 0x3d4   : > { %1203 = vsyncadd (!%p1068_p4), %s927_s17, 4294966912  ;;  %s1631_s28 = sld [smem:[#allocation8_spill]]  ;;  %s1632_s11 = sld [smem:[#allocation9_spill]] }
 0x3d5   : > { %p22_p7 = scmp.ge.s32.totalorder %s1309_s15, 4   ;;  %s1633_s30 = smov %s1210_s10 }
 0x3d6   : > { %s1635_s12 = smov %s1309_s15 }
 0x3d7   :  { %24 = sbr.rel (!%p22_p7) target bundleno = 5 (0x5), region = 104 }
 0x3da   : > { %s1634_s10 = smov %s1631_s28 }
 0x3de   :  { %932 = vsyncpa [#allocation3], 1 }
 0x3df   :  { %934 = vsyncpa [#allocation3 + $0x1], 1 }
 0x3e0   :  { %935 = vsyncpa [#allocation4], 1 }
 0x3e1   :  { %937 = vsyncpa [#allocation4 + $0x1], 1 }

</bundles_post_ra>
